<compile_context>
chip_gen: v7x
topology: tpu7x:2x2x1
jax: 0.10.0
libtpu: 0.0.40
codegen_flags: <defaults>
</compile_context>

<pallas_src>
import jax
import jax.numpy as jnp
import numpy as np
from jax.experimental import pallas as pl
from jax.experimental.pallas import tpu as pltpu

LN_EPS = 1e-5


# ----------------------------------------------------------------------------
# Kernel
# ----------------------------------------------------------------------------
def _tanh_layernorm(z, avg_ref):
    """tanh followed by per-head LayerNorm (gamma=1, beta=0 at init).

    `avg_ref` holds a constant block-diagonal averaging matrix (1/width inside
    each head's block): per-head mean / biased variance are computed on the MXU
    and arrive already broadcast to every lane of the head (no XLU reductions).
    """
    h = jnp.tanh(z)                                   # f32 VPU/EUP math
    avg = avg_ref[...]
    mean = jnp.dot(h, avg, preferred_element_type=jnp.float32)
    c = h - mean
    var = jnp.dot(c * c, avg, preferred_element_type=jnp.float32)
    return c * jax.lax.rsqrt(var + LN_EPS)


def _kernel(x_ref, w0_ref, w1_ref, wo_ref, b0_ref, b1_ref, bo_ref,
            ln0_ref, ln1_ref, out_ref):
    cdt = w0_ref.dtype  # compute dtype for MXU operands (bf16 or f32)

    # Layer 0: one wide matmul for all heads: (tb, F) @ (F, H*F/2).
    a = jnp.dot(x_ref[...].astype(cdt), w0_ref[...],
                preferred_element_type=jnp.float32) + b0_ref[...]
    a = _tanh_layernorm(a, ln0_ref)

    # Layer 1: block-diagonal combined weight: (tb, H*F/2) @ (H*F/2, H*F/4).
    a = jnp.dot(a.astype(cdt), w1_ref[...],
                preferred_element_type=jnp.float32) + b1_ref[...]
    a = _tanh_layernorm(a, ln1_ref)

    # Output layer: block-diagonal weight directly emits the lane-dense
    # concatenated logits slab (tb, H*out) — no per-head concat.
    o = jnp.tanh(jnp.dot(a.astype(cdt), wo_ref[...],
                         preferred_element_type=jnp.float32) + bo_ref[...])
    out_ref[...] = o.astype(out_ref.dtype)


# ----------------------------------------------------------------------------
# Wrapper
# ----------------------------------------------------------------------------
def _round_up(v, m):
    return ((v + m - 1) // m) * m


def multi_task_linear_block(x, fused_params, *, batch_tile=1024):
    """x: (B, F). fused_params: output of fuse_params(). Returns (B, H*out)."""
    w0, w1, wo = fused_params["w0"], fused_params["w1"], fused_params["wo"]
    b0, b1, bo = fused_params["b0"], fused_params["b1"], fused_params["bo"]
    ln0, ln1 = fused_params["ln0"], fused_params["ln1"]

    B, F = x.shape
    HF2, HF4, HFo = w0.shape[1], w1.shape[1], wo.shape[1]

    # Batch tiling: big tiles amortize grid-step overhead, but keep >= 2 tiles
    # when B allows so both v7x TensorCores get work on the "parallel" axis.
    if B <= 8:
        tb = B
    else:
        tb = min(_round_up(batch_tile, 8),
                 _round_up(pl.cdiv(B, 2), 8),
                 _round_up(B, 8))
    grid = (pl.cdiv(B, tb),)

    # VMEM budget from the actual footprint (weights stay resident across tiles).
    w_bytes = sum(int(np.prod(a.shape)) * a.dtype.itemsize for a in (w0, w1, wo))
    const_bytes = sum(int(np.prod(a.shape)) * a.dtype.itemsize
                      for a in (b0, b1, bo, ln0, ln1))
    io_bytes = 2 * tb * F * x.dtype.itemsize + 2 * tb * HFo * x.dtype.itemsize
    act_bytes = 4 * tb * (HF2 + HF4 + HFo) * 4          # f32 intermediates headroom
    vmem_limit = int(min(max(2 * (2 * w_bytes + 2 * const_bytes + io_bytes + act_bytes),
                             16 * 1024 * 1024),
                         64 * 1024 * 1024))              # <= v7x per-TC VMEM

    const_map = lambda i: (0, 0)

    def build_and_run(single_buffer_consts):
        if single_buffer_consts:
            # Constant block index -> no point double-buffering these in VMEM.
            cspec = lambda shape: pl.BlockSpec(shape, const_map,
                                               pipeline_mode=pl.Buffered(1))
        else:
            cspec = lambda shape: pl.BlockSpec(shape, const_map)
        return pl.pallas_call(
            _kernel,
            out_shape=jax.ShapeDtypeStruct((B, HFo), x.dtype),
            grid_spec=pltpu.PrefetchScalarGridSpec(
                num_scalar_prefetch=0,
                grid=grid,
                in_specs=[
                    pl.BlockSpec((tb, F), lambda i: (i, 0)),   # x batch tile
                    cspec((F, HF2)),                           # W0 (heads concatenated)
                    cspec((HF2, HF4)),                         # W1 block-diagonal
                    cspec((HF4, HFo)),                         # Wo block-diagonal
                    cspec((1, HF2)),                           # b0 (all heads)
                    cspec((1, HF4)),                           # b1
                    cspec((1, HFo)),                           # bo
                    cspec((HF2, HF2)),                         # LN0 averaging matrix
                    cspec((HF4, HF4)),                         # LN1 averaging matrix
                ],
                out_specs=pl.BlockSpec((tb, HFo), lambda i: (i, 0)),  # lane-dense logits
            ),
            compiler_params=pltpu.CompilerParams(
                dimension_semantics=("parallel",),
                vmem_limit_bytes=vmem_limit,
            ),
        )(x, w0, w1, wo, b0, b1, bo, ln0, ln1)

    try:
        return build_and_run(True)
    except Exception:
        # Fallback for jax versions where pl.Buffered is not supported on the
        # TPU grid pipeline; constants are tiny so double-buffering is benign.
        return build_and_run(False)


# ----------------------------------------------------------------------------
# Parameter construction (matches the PyTorch module's init)
# ----------------------------------------------------------------------------
def _xavier_uniform(key, fan_in, fan_out, gain):
    bound = gain * np.sqrt(6.0 / (fan_in + fan_out))
    # pre-transposed to (fan_in, fan_out): kernel computes x @ W
    return jax.random.uniform(key, (fan_in, fan_out), jnp.float32, -bound, bound)


def init_params(key, num_heads, in_features, out_features, num_layers=2):
    """Per-head params: xavier_uniform(gain=relu) weights, zero biases."""
    assert num_layers == 2, "kernel is specialized for the default num_layers=2"
    gain = float(np.sqrt(2.0))  # nn.init.calculate_gain('relu')
    F, F2, F4 = in_features, in_features // 2, in_features // 4
    w0, w1, wo = [], [], []
    for _ in range(num_heads):
        k0, k1, k2, key = jax.random.split(key, 4)
        w0.append(_xavier_uniform(k0, F, F2, gain))
        w1.append(_xavier_uniform(k1, F2, F4, gain))
        wo.append(_xavier_uniform(k2, F4, out_features, gain))
    return {
        "w0": jnp.stack(w0),                               # (H, F,   F/2)
        "w1": jnp.stack(w1),                               # (H, F/2, F/4)
        "wo": jnp.stack(wo),                               # (H, F/4, out)
        "b0": jnp.zeros((num_heads, F2), jnp.float32),
        "b1": jnp.zeros((num_heads, F4), jnp.float32),
        "bo": jnp.zeros((num_heads, out_features), jnp.float32),
    }


def _block_diag(blocks):
    """blocks: (H, r, c) -> (H*r, H*c) block-diagonal matrix."""
    H, r, c = blocks.shape
    out = jnp.zeros((H * r, H * c), blocks.dtype)
    for h in range(H):
        out = out.at[h * r:(h + 1) * r, h * c:(h + 1) * c].set(blocks[h])
    return out


def fuse_params(params, compute_dtype=jnp.bfloat16):
    """Pack per-head params into the fused layout consumed by the kernel."""
    w0, w1, wo = params["w0"], params["w1"], params["wo"]
    H, F, F2 = w0.shape
    F4, Fo = w1.shape[2], wo.shape[2]
    w0_cat = jnp.transpose(w0, (1, 0, 2)).reshape(F, H * F2)   # head-major columns
    w1_bd = _block_diag(w1)                                    # (H*F2, H*F4)
    wo_bd = _block_diag(wo)                                    # (H*F4, H*Fo)
    # Block-diagonal averaging matrices for per-head LayerNorm moments (f32).
    ln0 = jnp.kron(jnp.eye(H, dtype=jnp.float32),
                   jnp.full((F2, F2), 1.0 / F2, jnp.float32))
    ln1 = jnp.kron(jnp.eye(H, dtype=jnp.float32),
                   jnp.full((F4, F4), 1.0 / F4, jnp.float32))
    return {
        "w0": w0_cat.astype(compute_dtype),
        "w1": w1_bd.astype(compute_dtype),
        "wo": wo_bd.astype(compute_dtype),
        "b0": params["b0"].reshape(1, H * F2).astype(jnp.float32),
        "b1": params["b1"].reshape(1, H * F4).astype(jnp.float32),
        "bo": params["bo"].reshape(1, H * Fo).astype(jnp.float32),
        "ln0": ln0,
        "ln1": ln1,
    }


# ----------------------------------------------------------------------------
# Pure-JAX reference (per-head, jnp.mean-based LayerNorm) for verification
# ----------------------------------------------------------------------------
def _reference(x, params):
    def layernorm(h):
        mean = jnp.mean(h, axis=-1, keepdims=True)
        var = jnp.mean((h - mean) ** 2, axis=-1, keepdims=True)
        return (h - mean) * jax.lax.rsqrt(var + LN_EPS)

    H = params["w0"].shape[0]
    outs = []
    for h in range(H):
        a = x @ params["w0"][h] + params["b0"][h]
        a = layernorm(jnp.tanh(a))
        a = a @ params["w1"][h] + params["b1"][h]
        a = layernorm(jnp.tanh(a))
        outs.append(jnp.tanh(a @ params["wo"][h] + params["bo"][h]))
    return jnp.concatenate(outs, axis=1)


if __name__ == "__main__":
    key = jax.random.PRNGKey(0)
    k_x, k_p = jax.random.split(key)

    B, F = 8, 32           # batch, in_features (x.representations)
    H, OUT = 3, 1          # number of heads, out_features per head
    x = jax.random.normal(k_x, (B, F), jnp.float32)
    params = init_params(k_p, H, F, OUT)
    ref = _reference(x, params)

    # f32 compute path: tight check against the pure-JAX reference.
    logits_f32 = jax.block_until_ready(
        multi_task_linear_block(x, fuse_params(params, compute_dtype=jnp.float32)))
    assert logits_f32.shape == (B, H * OUT), logits_f32.shape
    np.testing.assert_allclose(np.asarray(logits_f32), np.asarray(ref),
                               atol=5e-5, rtol=5e-5)

    # bf16 matmul-operand path (production default on v5e/v6e/v7x): smoke run
    # with a loose tolerance appropriate for bf16 MXU operands.
    logits_bf16 = jax.block_until_ready(
        multi_task_linear_block(x, fuse_params(params, compute_dtype=jnp.bfloat16)))
    assert logits_bf16.shape == (B, H * OUT)
    assert bool(jnp.all(jnp.isfinite(logits_bf16)))
    np.testing.assert_allclose(np.asarray(logits_bf16), np.asarray(ref),
                               atol=0.25, rtol=0.25)

    # TODO(synk): LayerNorm affine (gamma/beta) and dropout are identity at init
    # and are folded out; a trained checkpoint needs gamma/beta (and dropout)
    # passed as extra kernel inputs before production use.
    print("KERNEL_OK")
</pallas_src>

<mosaic_0001>
module attributes {stable_mosaic.version = 11 : i64} {
  func.func @_kernel(%arg0: i32, %arg1: memref<8x32xf32, #tpu.memory_space<vmem>>, %arg2: memref<32x48xf32, #tpu.memory_space<vmem>>, %arg3: memref<48x24xf32, #tpu.memory_space<vmem>>, %arg4: memref<24x3xf32, #tpu.memory_space<vmem>>, %arg5: memref<1x48xf32, #tpu.memory_space<vmem>>, %arg6: memref<1x24xf32, #tpu.memory_space<vmem>>, %arg7: memref<1x3xf32, #tpu.memory_space<vmem>>, %arg8: memref<48x48xf32, #tpu.memory_space<vmem>>, %arg9: memref<24x24xf32, #tpu.memory_space<vmem>>, %arg10: memref<8x3xf32, #tpu.memory_space<vmem>>) attributes {dimension_semantics = [#tpu.dimension_semantics<parallel>], iteration_bounds = array<i64: 1>, scalar_prefetch = 0 : i64, scratch_operands = 0 : i64, tpu.core_type = #tpu.core_type<tc>, window_params = [{transform_indices = @transform_0, window_bounds = array<i64: 8, 32>}, {pipeline_mode = #tpu.pipeline_mode<synchronous>, transform_indices = @transform_1, window_bounds = array<i64: 32, 48>}, {pipeline_mode = #tpu.pipeline_mode<synchronous>, transform_indices = @transform_2, window_bounds = array<i64: 48, 24>}, {pipeline_mode = #tpu.pipeline_mode<synchronous>, transform_indices = @transform_3, window_bounds = array<i64: 24, 3>}, {pipeline_mode = #tpu.pipeline_mode<synchronous>, transform_indices = @transform_4, window_bounds = array<i64: 1, 48>}, {pipeline_mode = #tpu.pipeline_mode<synchronous>, transform_indices = @transform_5, window_bounds = array<i64: 1, 24>}, {pipeline_mode = #tpu.pipeline_mode<synchronous>, transform_indices = @transform_6, window_bounds = array<i64: 1, 3>}, {pipeline_mode = #tpu.pipeline_mode<synchronous>, transform_indices = @transform_7, window_bounds = array<i64: 48, 48>}, {pipeline_mode = #tpu.pipeline_mode<synchronous>, transform_indices = @transform_8, window_bounds = array<i64: 24, 24>}, {transform_indices = @transform_9, window_bounds = array<i64: 8, 3>}]} {
    %c0 = arith.constant 0 : index
    %c0_0 = arith.constant 0 : index
    %0 = vector.load %arg1[%c0, %c0_0] : memref<8x32xf32, #tpu.memory_space<vmem>>, vector<8x32xf32>
    %c0_1 = arith.constant 0 : index
    %c0_2 = arith.constant 0 : index
    %1 = vector.load %arg2[%c0_1, %c0_2] : memref<32x48xf32, #tpu.memory_space<vmem>>, vector<32x48xf32>
    %cst = arith.constant dense<0.000000e+00> : vector<8x48xf32>
    %2 = tpu.matmul %0, %1, %cst {dimension_numbers = #tpu.dot_dimension_numbers<[1], [0], [0], [1], [0, 0, 1, 1], [], []>} : vector<8x32xf32>, vector<32x48xf32>, vector<8x48xf32> -> vector<8x48xf32>
    %c0_3 = arith.constant 0 : index
    %c0_4 = arith.constant 0 : index
    %3 = vector.load %arg5[%c0_3, %c0_4] : memref<1x48xf32, #tpu.memory_space<vmem>>, vector<1x48xf32>
    %4 = vector.broadcast %3 : vector<1x48xf32> to vector<8x48xf32>
    %5 = arith.addf %2, %4 : vector<8x48xf32>
    %6 = math.tanh %5 : vector<8x48xf32>
    %c0_5 = arith.constant 0 : index
    %c0_6 = arith.constant 0 : index
    %7 = vector.load %arg8[%c0_5, %c0_6] : memref<48x48xf32, #tpu.memory_space<vmem>>, vector<48x48xf32>
    %cst_7 = arith.constant dense<0.000000e+00> : vector<8x48xf32>
    %8 = tpu.matmul %6, %7, %cst_7 {dimension_numbers = #tpu.dot_dimension_numbers<[1], [0], [0], [1], [0, 0, 1, 1], [], []>} : vector<8x48xf32>, vector<48x48xf32>, vector<8x48xf32> -> vector<8x48xf32>
    %9 = arith.subf %6, %8 : vector<8x48xf32>
    %10 = arith.mulf %9, %9 : vector<8x48xf32>
    %cst_8 = arith.constant dense<0.000000e+00> : vector<8x48xf32>
    %11 = tpu.matmul %10, %7, %cst_8 {dimension_numbers = #tpu.dot_dimension_numbers<[1], [0], [0], [1], [0, 0, 1, 1], [], []>} : vector<8x48xf32>, vector<48x48xf32>, vector<8x48xf32> -> vector<8x48xf32>
    %cst_9 = arith.constant 9.99999974E-6 : f32
    %12 = vector.broadcast %cst_9 : f32 to vector<8x48xf32>
    %13 = arith.addf %11, %12 : vector<8x48xf32>
    %14 = math.rsqrt %13 : vector<8x48xf32>
    %15 = arith.mulf %9, %14 : vector<8x48xf32>
    %c0_10 = arith.constant 0 : index
    %c0_11 = arith.constant 0 : index
    %16 = vector.load %arg3[%c0_10, %c0_11] : memref<48x24xf32, #tpu.memory_space<vmem>>, vector<48x24xf32>
    %cst_12 = arith.constant dense<0.000000e+00> : vector<8x24xf32>
    %17 = tpu.matmul %15, %16, %cst_12 {dimension_numbers = #tpu.dot_dimension_numbers<[1], [0], [0], [1], [0, 0, 1, 1], [], []>} : vector<8x48xf32>, vector<48x24xf32>, vector<8x24xf32> -> vector<8x24xf32>
    %c0_13 = arith.constant 0 : index
    %c0_14 = arith.constant 0 : index
    %18 = vector.load %arg6[%c0_13, %c0_14] : memref<1x24xf32, #tpu.memory_space<vmem>>, vector<1x24xf32>
    %19 = vector.broadcast %18 : vector<1x24xf32> to vector<8x24xf32>
    %20 = arith.addf %17, %19 : vector<8x24xf32>
    %21 = math.tanh %20 : vector<8x24xf32>
    %c0_15 = arith.constant 0 : index
    %c0_16 = arith.constant 0 : index
    %22 = vector.load %arg9[%c0_15, %c0_16] : memref<24x24xf32, #tpu.memory_space<vmem>>, vector<24x24xf32>
    %cst_17 = arith.constant dense<0.000000e+00> : vector<8x24xf32>
    %23 = tpu.matmul %21, %22, %cst_17 {dimension_numbers = #tpu.dot_dimension_numbers<[1], [0], [0], [1], [0, 0, 1, 1], [], []>} : vector<8x24xf32>, vector<24x24xf32>, vector<8x24xf32> -> vector<8x24xf32>
    %24 = arith.subf %21, %23 : vector<8x24xf32>
    %25 = arith.mulf %24, %24 : vector<8x24xf32>
    %cst_18 = arith.constant dense<0.000000e+00> : vector<8x24xf32>
    %26 = tpu.matmul %25, %22, %cst_18 {dimension_numbers = #tpu.dot_dimension_numbers<[1], [0], [0], [1], [0, 0, 1, 1], [], []>} : vector<8x24xf32>, vector<24x24xf32>, vector<8x24xf32> -> vector<8x24xf32>
    %cst_19 = arith.constant 9.99999974E-6 : f32
    %27 = vector.broadcast %cst_19 : f32 to vector<8x24xf32>
    %28 = arith.addf %26, %27 : vector<8x24xf32>
    %29 = math.rsqrt %28 : vector<8x24xf32>
    %30 = arith.mulf %24, %29 : vector<8x24xf32>
    %c0_20 = arith.constant 0 : index
    %c0_21 = arith.constant 0 : index
    %31 = vector.load %arg4[%c0_20, %c0_21] : memref<24x3xf32, #tpu.memory_space<vmem>>, vector<24x3xf32>
    %cst_22 = arith.constant dense<0.000000e+00> : vector<8x3xf32>
    %32 = tpu.matmul %30, %31, %cst_22 {dimension_numbers = #tpu.dot_dimension_numbers<[1], [0], [0], [1], [0, 0, 1, 1], [], []>} : vector<8x24xf32>, vector<24x3xf32>, vector<8x3xf32> -> vector<8x3xf32>
    %c0_23 = arith.constant 0 : index
    %c0_24 = arith.constant 0 : index
    %33 = vector.load %arg7[%c0_23, %c0_24] : memref<1x3xf32, #tpu.memory_space<vmem>>, vector<1x3xf32>
    %34 = vector.broadcast %33 : vector<1x3xf32> to vector<8x3xf32>
    %35 = arith.addf %32, %34 : vector<8x3xf32>
    %36 = math.tanh %35 : vector<8x3xf32>
    %c0_25 = arith.constant 0 : index
    %c0_26 = arith.constant 0 : index
    %37 = vector.load %arg10[%c0_25, %c0_26] : memref<8x3xf32, #tpu.memory_space<vmem>>, vector<8x3xf32>
    tpu.vector_store %arg10[%c0_25, %c0_26], %36 {strides = array<i32>} : memref<8x3xf32, #tpu.memory_space<vmem>>, vector<8x3xf32>,
    return
  }
  func.func @transform_0(%arg0: i32) -> (i32, i32) {
    %c0_i32 = arith.constant 0 : i32
    %c0_i32_0 = arith.constant 0 : i32
    return %arg0, %c0_i32 : i32, i32
  }
  func.func @transform_1(%arg0: i32) -> (i32, i32) {
    %c0_i32 = arith.constant 0 : i32
    %c0_i32_0 = arith.constant 0 : i32
    %c0_i32_1 = arith.constant 0 : i32
    return %c0_i32, %c0_i32_0 : i32, i32
  }
  func.func @transform_2(%arg0: i32) -> (i32, i32) {
    %c0_i32 = arith.constant 0 : i32
    %c0_i32_0 = arith.constant 0 : i32
    %c0_i32_1 = arith.constant 0 : i32
    return %c0_i32, %c0_i32_0 : i32, i32
  }
  func.func @transform_3(%arg0: i32) -> (i32, i32) {
    %c0_i32 = arith.constant 0 : i32
    %c0_i32_0 = arith.constant 0 : i32
    %c0_i32_1 = arith.constant 0 : i32
    return %c0_i32, %c0_i32_0 : i32, i32
  }
  func.func @transform_4(%arg0: i32) -> (i32, i32) {
    %c0_i32 = arith.constant 0 : i32
    %c0_i32_0 = arith.constant 0 : i32
    %c0_i32_1 = arith.constant 0 : i32
    return %c0_i32, %c0_i32_0 : i32, i32
  }
  func.func @transform_5(%arg0: i32) -> (i32, i32) {
    %c0_i32 = arith.constant 0 : i32
    %c0_i32_0 = arith.constant 0 : i32
    %c0_i32_1 = arith.constant 0 : i32
    return %c0_i32, %c0_i32_0 : i32, i32
  }
  func.func @transform_6(%arg0: i32) -> (i32, i32) {
    %c0_i32 = arith.constant 0 : i32
    %c0_i32_0 = arith.constant 0 : i32
    %c0_i32_1 = arith.constant 0 : i32
    return %c0_i32, %c0_i32_0 : i32, i32
  }
  func.func @transform_7(%arg0: i32) -> (i32, i32) {
    %c0_i32 = arith.constant 0 : i32
    %c0_i32_0 = arith.constant 0 : i32
    %c0_i32_1 = arith.constant 0 : i32
    return %c0_i32, %c0_i32_0 : i32, i32
  }
  func.func @transform_8(%arg0: i32) -> (i32, i32) {
    %c0_i32 = arith.constant 0 : i32
    %c0_i32_0 = arith.constant 0 : i32
    %c0_i32_1 = arith.constant 0 : i32
    return %c0_i32, %c0_i32_0 : i32, i32
  }
  func.func @transform_9(%arg0: i32) -> (i32, i32) {
    %c0_i32 = arith.constant 0 : i32
    %c0_i32_0 = arith.constant 0 : i32
    return %arg0, %c0_i32 : i32, i32
  }
}

module attributes {stable_mosaic.version = 11 : i64} {
  func.func @_kernel(%arg0: i32, %arg1: memref<8x32xf32, #tpu.memory_space<vmem>>, %arg2: memref<32x48xf32, #tpu.memory_space<vmem>>, %arg3: memref<48x24xf32, #tpu.memory_space<vmem>>, %arg4: memref<24x3xf32, #tpu.memory_space<vmem>>, %arg5: memref<1x48xf32, #tpu.memory_space<vmem>>, %arg6: memref<1x24xf32, #tpu.memory_space<vmem>>, %arg7: memref<1x3xf32, #tpu.memory_space<vmem>>, %arg8: memref<48x48xf32, #tpu.memory_space<vmem>>, %arg9: memref<24x24xf32, #tpu.memory_space<vmem>>, %arg10: memref<8x3xf32, #tpu.memory_space<vmem>>) attributes {dimension_semantics = [#tpu.dimension_semantics<parallel>], iteration_bounds = array<i64: 1>, scalar_prefetch = 0 : i64, scratch_operands = 0 : i64, tpu.core_type = #tpu.core_type<tc>, window_params = [{transform_indices = @transform_0, window_bounds = array<i64: 8, 32>}, {pipeline_mode = #tpu.pipeline_mode<synchronous>, transform_indices = @transform_1, window_bounds = array<i64: 32, 48>}, {pipeline_mode = #tpu.pipeline_mode<synchronous>, transform_indices = @transform_2, window_bounds = array<i64: 48, 24>}, {pipeline_mode = #tpu.pipeline_mode<synchronous>, transform_indices = @transform_3, window_bounds = array<i64: 24, 3>}, {pipeline_mode = #tpu.pipeline_mode<synchronous>, transform_indices = @transform_4, window_bounds = array<i64: 1, 48>}, {pipeline_mode = #tpu.pipeline_mode<synchronous>, transform_indices = @transform_5, window_bounds = array<i64: 1, 24>}, {pipeline_mode = #tpu.pipeline_mode<synchronous>, transform_indices = @transform_6, window_bounds = array<i64: 1, 3>}, {pipeline_mode = #tpu.pipeline_mode<synchronous>, transform_indices = @transform_7, window_bounds = array<i64: 48, 48>}, {pipeline_mode = #tpu.pipeline_mode<synchronous>, transform_indices = @transform_8, window_bounds = array<i64: 24, 24>}, {transform_indices = @transform_9, window_bounds = array<i64: 8, 3>}]} {
    %c0 = arith.constant 0 : index
    %c0_0 = arith.constant 0 : index
    %0 = vector.load %arg1[%c0, %c0_0] : memref<8x32xf32, #tpu.memory_space<vmem>>, vector<8x32xf32>
    %c0_1 = arith.constant 0 : index
    %c0_2 = arith.constant 0 : index
    %1 = vector.load %arg2[%c0_1, %c0_2] : memref<32x48xf32, #tpu.memory_space<vmem>>, vector<32x48xf32>
    %cst = arith.constant dense<0.000000e+00> : vector<8x48xf32>
    %2 = tpu.matmul %0, %1, %cst {dimension_numbers = #tpu.dot_dimension_numbers<[1], [0], [0], [1], [0, 0, 1, 1], [], []>} : vector<8x32xf32>, vector<32x48xf32>, vector<8x48xf32> -> vector<8x48xf32>
    %c0_3 = arith.constant 0 : index
    %c0_4 = arith.constant 0 : index
    %3 = vector.load %arg5[%c0_3, %c0_4] : memref<1x48xf32, #tpu.memory_space<vmem>>, vector<1x48xf32>
    %4 = vector.broadcast %3 : vector<1x48xf32> to vector<8x48xf32>
    %5 = arith.addf %2, %4 : vector<8x48xf32>
    %6 = math.tanh %5 : vector<8x48xf32>
    %c0_5 = arith.constant 0 : index
    %c0_6 = arith.constant 0 : index
    %7 = vector.load %arg8[%c0_5, %c0_6] : memref<48x48xf32, #tpu.memory_space<vmem>>, vector<48x48xf32>
    %cst_7 = arith.constant dense<0.000000e+00> : vector<8x48xf32>
    %8 = tpu.matmul %6, %7, %cst_7 {dimension_numbers = #tpu.dot_dimension_numbers<[1], [0], [0], [1], [0, 0, 1, 1], [], []>} : vector<8x48xf32>, vector<48x48xf32>, vector<8x48xf32> -> vector<8x48xf32>
    %9 = arith.subf %6, %8 : vector<8x48xf32>
    %10 = arith.mulf %9, %9 : vector<8x48xf32>
    %cst_8 = arith.constant dense<0.000000e+00> : vector<8x48xf32>
    %11 = tpu.matmul %10, %7, %cst_8 {dimension_numbers = #tpu.dot_dimension_numbers<[1], [0], [0], [1], [0, 0, 1, 1], [], []>} : vector<8x48xf32>, vector<48x48xf32>, vector<8x48xf32> -> vector<8x48xf32>
    %cst_9 = arith.constant 9.99999974E-6 : f32
    %12 = vector.broadcast %cst_9 : f32 to vector<8x48xf32>
    %13 = arith.addf %11, %12 : vector<8x48xf32>
    %14 = math.rsqrt %13 : vector<8x48xf32>
    %15 = arith.mulf %9, %14 : vector<8x48xf32>
    %c0_10 = arith.constant 0 : index
    %c0_11 = arith.constant 0 : index
    %16 = vector.load %arg3[%c0_10, %c0_11] : memref<48x24xf32, #tpu.memory_space<vmem>>, vector<48x24xf32>
    %cst_12 = arith.constant dense<0.000000e+00> : vector<8x24xf32>
    %17 = tpu.matmul %15, %16, %cst_12 {dimension_numbers = #tpu.dot_dimension_numbers<[1], [0], [0], [1], [0, 0, 1, 1], [], []>} : vector<8x48xf32>, vector<48x24xf32>, vector<8x24xf32> -> vector<8x24xf32>
    %c0_13 = arith.constant 0 : index
    %c0_14 = arith.constant 0 : index
    %18 = vector.load %arg6[%c0_13, %c0_14] : memref<1x24xf32, #tpu.memory_space<vmem>>, vector<1x24xf32>
    %19 = vector.broadcast %18 : vector<1x24xf32> to vector<8x24xf32>
    %20 = arith.addf %17, %19 : vector<8x24xf32>
    %21 = math.tanh %20 : vector<8x24xf32>
    %c0_15 = arith.constant 0 : index
    %c0_16 = arith.constant 0 : index
    %22 = vector.load %arg9[%c0_15, %c0_16] : memref<24x24xf32, #tpu.memory_space<vmem>>, vector<24x24xf32>
    %cst_17 = arith.constant dense<0.000000e+00> : vector<8x24xf32>
    %23 = tpu.matmul %21, %22, %cst_17 {dimension_numbers = #tpu.dot_dimension_numbers<[1], [0], [0], [1], [0, 0, 1, 1], [], []>} : vector<8x24xf32>, vector<24x24xf32>, vector<8x24xf32> -> vector<8x24xf32>
    %24 = arith.subf %21, %23 : vector<8x24xf32>
    %25 = arith.mulf %24, %24 : vector<8x24xf32>
    %cst_18 = arith.constant dense<0.000000e+00> : vector<8x24xf32>
    %26 = tpu.matmul %25, %22, %cst_18 {dimension_numbers = #tpu.dot_dimension_numbers<[1], [0], [0], [1], [0, 0, 1, 1], [], []>} : vector<8x24xf32>, vector<24x24xf32>, vector<8x24xf32> -> vector<8x24xf32>
    %cst_19 = arith.constant 9.99999974E-6 : f32
    %27 = vector.broadcast %cst_19 : f32 to vector<8x24xf32>
    %28 = arith.addf %26, %27 : vector<8x24xf32>
    %29 = math.rsqrt %28 : vector<8x24xf32>
    %30 = arith.mulf %24, %29 : vector<8x24xf32>
    %c0_20 = arith.constant 0 : index
    %c0_21 = arith.constant 0 : index
    %31 = vector.load %arg4[%c0_20, %c0_21] : memref<24x3xf32, #tpu.memory_space<vmem>>, vector<24x3xf32>
    %cst_22 = arith.constant dense<0.000000e+00> : vector<8x3xf32>
    %32 = tpu.matmul %30, %31, %cst_22 {dimension_numbers = #tpu.dot_dimension_numbers<[1], [0], [0], [1], [0, 0, 1, 1], [], []>} : vector<8x24xf32>, vector<24x3xf32>, vector<8x3xf32> -> vector<8x3xf32>
    %c0_23 = arith.constant 0 : index
    %c0_24 = arith.constant 0 : index
    %33 = vector.load %arg7[%c0_23, %c0_24] : memref<1x3xf32, #tpu.memory_space<vmem>>, vector<1x3xf32>
    %34 = vector.broadcast %33 : vector<1x3xf32> to vector<8x3xf32>
    %35 = arith.addf %32, %34 : vector<8x3xf32>
    %36 = math.tanh %35 : vector<8x3xf32>
    %c0_25 = arith.constant 0 : index
    %c0_26 = arith.constant 0 : index
    %37 = vector.load %arg10[%c0_25, %c0_26] : memref<8x3xf32, #tpu.memory_space<vmem>>, vector<8x3xf32>
    tpu.vector_store %arg10[%c0_25, %c0_26], %36 {strides = array<i32>} : memref<8x3xf32, #tpu.memory_space<vmem>>, vector<8x3xf32>,
    return
  }
  func.func @transform_0(%arg0: i32) -> (i32, i32) {
    %c0_i32 = arith.constant 0 : i32
    %c0_i32_0 = arith.constant 0 : i32
    return %arg0, %c0_i32 : i32, i32
  }
  func.func @transform_1(%arg0: i32) -> (i32, i32) {
    %c0_i32 = arith.constant 0 : i32
    %c0_i32_0 = arith.constant 0 : i32
    %c0_i32_1 = arith.constant 0 : i32
    return %c0_i32, %c0_i32_0 : i32, i32
  }
  func.func @transform_2(%arg0: i32) -> (i32, i32) {
    %c0_i32 = arith.constant 0 : i32
    %c0_i32_0 = arith.constant 0 : i32
    %c0_i32_1 = arith.constant 0 : i32
    return %c0_i32, %c0_i32_0 : i32, i32
  }
  func.func @transform_3(%arg0: i32) -> (i32, i32) {
    %c0_i32 = arith.constant 0 : i32
    %c0_i32_0 = arith.constant 0 : i32
    %c0_i32_1 = arith.constant 0 : i32
    return %c0_i32, %c0_i32_0 : i32, i32
  }
  func.func @transform_4(%arg0: i32) -> (i32, i32) {
    %c0_i32 = arith.constant 0 : i32
    %c0_i32_0 = arith.constant 0 : i32
    %c0_i32_1 = arith.constant 0 : i32
    return %c0_i32, %c0_i32_0 : i32, i32
  }
  func.func @transform_5(%arg0: i32) -> (i32, i32) {
    %c0_i32 = arith.constant 0 : i32
    %c0_i32_0 = arith.constant 0 : i32
    %c0_i32_1 = arith.constant 0 : i32
    return %c0_i32, %c0_i32_0 : i32, i32
  }
  func.func @transform_6(%arg0: i32) -> (i32, i32) {
    %c0_i32 = arith.constant 0 : i32
    %c0_i32_0 = arith.constant 0 : i32
    %c0_i32_1 = arith.constant 0 : i32
    return %c0_i32, %c0_i32_0 : i32, i32
  }
  func.func @transform_7(%arg0: i32) -> (i32, i32) {
    %c0_i32 = arith.constant 0 : i32
    %c0_i32_0 = arith.constant 0 : i32
    %c0_i32_1 = arith.constant 0 : i32
    return %c0_i32, %c0_i32_0 : i32, i32
  }
  func.func @transform_8(%arg0: i32) -> (i32, i32) {
    %c0_i32 = arith.constant 0 : i32
    %c0_i32_0 = arith.constant 0 : i32
    %c0_i32_1 = arith.constant 0 : i32
    return %c0_i32, %c0_i32_0 : i32, i32
  }
  func.func @transform_9(%arg0: i32) -> (i32, i32) {
    %c0_i32 = arith.constant 0 : i32
    %c0_i32_0 = arith.constant 0 : i32
    return %arg0, %c0_i32 : i32, i32
  }
}

</mosaic_0001>

<bundles_post_ra>
// kernel: tpu_custom_call.1
= control target key start
LH: loop header
LB: loop body
LE: loop exit
PB: predicated region body
PF: predicated region fallthrough
CT: control target
= control target key end

     0   :  { %14 = vsyncpa [#allocation3], 0  ;;  %s831_s30 = smov [#allocation2]   ;;  %s1012_s0 = inlined_call_operand.hbm [shape: f32[8,32], index: 0, kind: input, shape index: {}]   ;;  %s1013_s1 = inlined_call_operand.vmem [shape: f32[32,48], index: 1, kind: input, shape index: {}]   ;;  %s1014_s2 = inlined_call_operand.vmem [shape: f32[48,24], index: 2, kind: input, shape index: {}]   ;;  %s1015_s3 = inlined_call_operand.vmem [shape: f32[24,3], index: 3, kind: input, shape index: {}]   ;;  %s1016_s4 = inlined_call_operand.vmem [shape: f32[1,48], index: 4, kind: input, shape index: {}]   ;;  %s1017_s5 = inlined_call_operand.vmem [shape: f32[1,24], index: 5, kind: input, shape index: {}]   ;;  %s1018_s6 = inlined_call_operand.vmem [shape: f32[1,3], index: 6, kind: input, shape index: {}]   ;;  %s1019_s7 = inlined_call_operand.vmem [shape: f32[48,48], index: 7, kind: input, shape index: {}]   ;;  %s1020_s8 = inlined_call_operand.vmem [shape: f32[24,24], index: 8, kind: input, shape index: {}]   ;;  %s1021_s9 = inlined_call_operand.vmem [shape: f32[8,3], index: 9, kind: output, shape index: {}]  }
   0x1   :  { %s21_s10 = sshll.u32 %s831_s30, 4  ;;  %s807_s13 = scalar_lea.hbm %s1012_s0, 128  ;;  %s22_s10 = int_to_ptr.vmem [resolvable:$true] %s21_s10 }
   0x2   :  { %p808_p0 = scmp.ne.s32.totalorder %s1012_s0, %s807_s13  ;;  %p811_p1 = scmp.lt.u32.totalorder %s807_s13, %s1012_s0 }
   0x4   :  { %p813_p2 = pnand %p811_p1, %p808_p0 }
   0x6   :  { %816 = shalt.err (!%p813_p2)
}
   0x7   :  { %s817_s18 = scalar_lea.vmem %s22_s10, 128  ;;  %p822_p4 = scmp.lt.s32.totalorder %s22_s10, %s22_s10 }
   0x8   :  { %p818_p3 = scmp.ne.s32.totalorder %s22_s10, %s817_s18  ;;  %p823_p5 = scmp.lt.s32.totalorder %s817_s18, %s817_s18 }
   0xa   :  { %p824_p6 = por %p823_p5, %p822_p4 }
   0xc   :  { %p825_p7 = pnand %p824_p6, %p818_p3 }
   0xe   :  { %828 = shalt.err (!%p825_p7)
}
   0xf   :  { %24 = dma.hbm_to_vmem [thread:$0]  %s1012_s0, 128, %s22_s10, [#allocation3]  }
  0x10   :  { %829 = dma.done.wait [#allocation3], 128  }
  0x11   :  { %830 = vsyncadd [#allocation3], 4294967168  ;;  %v832_v0 = vmov 0.0|0.0   ;;  %vm833_vm0 = vmmov 0   ;;  %v834_v1 = vmov 0.0   ;;  %v45_v2 = vld [vmem:[%s1013_s1] sm:$0xff] }
  0x12   :  { %751 = vmatprep.subr.bf16.mxu0 %v832_v0  ;;  %676 = vmatprep.mubr.msk.f32.mxu0 %vm833_vm0, %v834_v1  ;;  %v46_v3 = vld [vmem:[%s1013_s1 + $0x8] sm:$0xff]  ;;  %v47_v4 = vld [vmem:[%s1013_s1 + $0x10] sm:$0xff]  ;;  %v48_v6 = vld [vmem:[%s1013_s1 + $0x18] sm:$0xff]  ;;  %vm56_vm1 = vcmask 261120   ;;  %vm137_vm2 = vcmask 392192   ;;  %vm378_vm3 = vcmask 195584  }
  0x13   :  { %757 = vmatprep.subr.bf16.mxu1 %v832_v0  ;;  %691 = vmatprep.mubr.msk.f32.mxu1 %vm833_vm0, %v834_v1  ;;  %v752_v5 = vpack.c.bf16 %v46_v3, %v45_v2  ;;  %v755_v7 = vpack.c.bf16 %v48_v6, %v47_v4  ;;  %v44_v8 = vld [vmem:[#allocation2] sm:$0xff]  ;;  %v132_v10 = vld [vmem:[%s1019_s7 + $0x8] sm:$0xff]  ;;  %v133_v12 = vld [vmem:[%s1019_s7 + $0x10] sm:$0xff]  ;;  %vm613_vm4 = vcmask 23552  }
  0x14   :  { %v131_v9 = vld [vmem:[%s1019_s7] sm:$0xff]  ;;  %v134_v13 = vld [vmem:[%s1019_s7 + $0x18] sm:$0xff]  ;;  %v136_v16 = vld [vmem:[%s1019_s7 + $0x28] sm:$0xff] }
  0x15   :  { %753 = vmatpush3.bf16.msra.mxu0 %v752_v5  ;;  %v758_v11 = vpack.c.bf16 %v132_v10, %v131_v9  ;;  %v761_v14 = vpack.c.bf16 %v134_v13, %v133_v12  ;;  %v135_v15 = vld [vmem:[%s1019_s7 + $0x20] sm:$0xff]  ;;  %v289_v28 = vld [vmem:[%s1014_s2 + $0x8] sm:$0xff]  ;;  %v290_v30 = vld [vmem:[%s1014_s2 + $0x10] sm:$0xff] }
  0x16   :  { %754 = vmatprep.subr.bf16.mxu0 %v832_v0  ;;  %v764_v17 = vpack.c.bf16 %v136_v16, %v135_v15  ;;  %v620_v18 = vld [vmem:[%s1016_s4] ss:$0 sm:$0xff]  ;;  %v291_v31 = vld [vmem:[%s1014_s2 + $0x18] sm:$0xff]  ;;  %v293_v34 = vld [vmem:[%s1014_s2 + $0x28] sm:$0xff] }
  0x17   :  { %759 = vmatpush3.bf16.msra.mxu1 %v758_v11  ;;  %v288_v27 = vld [vmem:[%s1014_s2] sm:$0xff]  ;;  %v779_v32 = vpack.c.bf16 %v291_v31, %v290_v30  ;;  %v376_v42 = vld [vmem:[%s1020_s8 + $0x8] sm:$0xff]  ;;  %v377_v44 = vld [vmem:[%s1020_s8 + $0x10] sm:$0xff] }
  0x18   :  { %760 = vmatprep.subr.bf16.mxu1 %v832_v0  ;;  %v776_v29 = vpack.c.bf16 %v289_v28, %v288_v27  ;;  %v292_v33 = vld [vmem:[%s1014_s2 + $0x20] sm:$0xff]  ;;  %v530_v55 = vld [vmem:[%s1015_s3 + $0x8] sm:$0xff]  ;;  %v531_v57 = vld [vmem:[%s1015_s3 + $0x10] sm:$0xff] }
  0x19   :  { %756 = vmatpush3.bf16.msra.mxu0 %v755_v7  ;;  %v782_v35 = vpack.c.bf16 %v293_v34, %v292_v33  ;;  %v375_v41 = vld [vmem:[%s1020_s8] sm:$0xff] }
  0x1a   :  { %766 = vmatprep.subr.bf16.mxu0 %v832_v0  ;;  %v785_v43 = vpack.c.bf16 %v376_v42, %v375_v41  ;;  %v624_v45 = vld [vmem:[%s1017_s5] ss:$0 sm:$0xff] }
  0x1b   :  { %762 = vmatpush3.bf16.msra.mxu1 %v761_v14  ;;  %v529_v54 = vld [vmem:[%s1015_s3] sm:$0xff] }
  0x1c   :  { %677 = vmatmul.mubr.msk.f32.vlgmr.msra.gmra.mrb[0].mxu0 %vm56_vm1, %v44_v8  ;;  %763 = vmatprep.subr.bf16.mxu1 %v832_v0  ;;  %v791_v56 = vpack.c.bf16 %v530_v55, %v529_v54  ;;  %v628_v63 = vld [vmem:[%s1018_s6] ss:$0 sm:$0xff] }
  0x1d   :  { %706 = vmatprep.mubr.msk.f32.mxu0 %vm833_vm0, %v834_v1  ;;  %768 = vmatpush3.bf16.msra.mxu0 %v758_v11 }
  0x1e   :  { %769 = vmatprep.subr.bf16.mxu0 %v832_v0 }
  0x1f   :  { %765 = vmatpush3.bf16.msra.mxu1 %v764_v17 }
  0x20   :  { %775 = vmatprep.subr.bf16.mxu1 %v832_v0 }
  0x21   :  { %771 = vmatpush3.bf16.msra.mxu0 %v761_v14 }
  0x22   :  { %772 = vmatprep.subr.bf16.mxu0 %v832_v0 }
  0x25   :  { %774 = vmatpush3.bf16.msra.mxu0 %v764_v17 }
  0x26   :  { %784 = vmatprep.subr.bf16.mxu0 %v832_v0 }
  0xef   :  { %v126_v19 = vpop.f32.mrb[0].mxu0 }
  0xf0   :  { %v127_v20 = vadd.f32 %v620_v18, %v126_v19  ;;  %v678_v21 = vpop.f32.mrb[1].mxu0 }
  0xf2   :  { %797 = vtanh.f32 %v127_v20 }
  0xfc   :  { %v798_v22 = vpop.eup %797 }
  0xfd   :  { %692 = vmatmul.mubr.msk.f32.vlgmr.msra.gmra.mrb[0].mxu1 %vm137_vm2, %v798_v22 }
  0xfe   :  { %721 = vmatprep.mubr.msk.f32.mxu1 %vm833_vm0, %v834_v1  ;;  %777 = vmatpush3.bf16.msra.mxu1 %v776_v29 }
  0xff   :  { %778 = vmatprep.subr.bf16.mxu1 %v832_v0 }
 0x102   :  { %780 = vmatpush3.bf16.msra.mxu1 %v779_v32 }
 0x103   :  { %781 = vmatprep.subr.bf16.mxu1 %v832_v0 }
 0x106   :  { %783 = vmatpush3.bf16.msra.mxu1 %v782_v35 }
 0x107   :  { %787 = vmatprep.subr.bf16.mxu1 %v832_v0 }
 0x1d0   :  { %v207_v23 = vpop.f32.mrb[0].mxu1 }
 0x1d1   :  { %v211_v24 = vsub.f32 %v798_v22, %v207_v23  ;;  %v693_v25 = vpop.f32.mrb[1].mxu1 }
 0x1d3   :  { %v212_v26 = vmul.f32 %v211_v24, %v211_v24 }
 0x1d5   :  { %707 = vmatmul.mubr.msk.f32.vlgmr.msra.gmra.mrb[2].mxu0 %vm137_vm2, %v212_v26 }
 0x1d6   :  { %730 = vmatprep.mubr.msk.f32.mxu0 %vm833_vm0, %v834_v1  ;;  %786 = vmatpush3.bf16.msra.mxu0 %v785_v43 }
 0x1d7   :  { %728 = vmatprep.subr.mxu0 %v834_v1 }
 0x1da   :  { %729 = vmatpush3.msra.mxu0 %v377_v44 }
 0x1db   :  { %790 = vmatprep.subr.bf16.mxu0 %v832_v0 }
 0x2a8   :  { %v282_v36 = vpop.f32.mrb[2].mxu0 }
 0x2a9   :  { %v283_v37 = vadd.f32 1e-05, %v282_v36  ;;  %v708_v38 = vpop.f32.mrb[3].mxu0 }
 0x2ab   :  { %799 = vrsqrt.f32 %v283_v37 }
 0x2b5   :  { %v800_v39 = vpop.eup %799 }
 0x2b6   :  { %v287_v40 = vmul.f32 %v800_v39, %v211_v24 }
 0x2b8   :  { %722 = vmatmul.mubr.msk.f32.vlgmr.msra.gmra.mrb[2].mxu1 %vm137_vm2, %v287_v40 }
 0x2b9   :  { %739 = vmatprep.mubr.msk.f32.mxu1 %vm833_vm0, %v834_v1  ;;  %789 = vmatpush3.bf16.msra.mxu1 %v785_v43 }
 0x2ba   :  { %737 = vmatprep.subr.mxu1 %v834_v1 }
 0x2bd   :  { %738 = vmatpush3.msra.mxu1 %v377_v44 }
 0x38b   :  { %v370_v46 = vpop.f32.mrb[2].mxu1 }
 0x38c   :  { %v371_v47 = vadd.f32 %v624_v45, %v370_v46  ;;  %v723_v48 = vpop.f32.mrb[3].mxu1 }
 0x38e   :  { %801 = vtanh.f32 %v371_v47 }
 0x398   :  { %v802_v49 = vpop.eup %801 }
 0x399   :  { %731 = vmatmul.mubr.msk.f32.vlgmr.msra.gmra.mrb[4].mxu0 %vm378_vm3, %v802_v49 }
 0x39a   :  { %748 = vmatprep.mubr.msk.f32.mxu0 %vm833_vm0, %v834_v1  ;;  %792 = vmatpush3.bf16.msra.mxu0 %v791_v56 }
 0x39b   :  { %746 = vmatprep.subr.mxu0 %v834_v1 }
 0x39e   :  { %747 = vmatpush3.msra.mxu0 %v531_v57 }
 0x46c   :  { %v448_v50 = vpop.f32.mrb[4].mxu0 }
 0x46d   :  { %v452_v51 = vsub.f32 %v802_v49, %v448_v50  ;;  %v732_v52 = vpop.f32.mrb[5].mxu0 }
 0x46f   :  { %v453_v53 = vmul.f32 %v452_v51, %v452_v51 }
 0x471   :  { %740 = vmatmul.mubr.msk.f32.vlgmr.msra.gmra.mrb[4].mxu1 %vm378_vm3, %v453_v53 }
 0x544   :  { %v523_v58 = vpop.f32.mrb[4].mxu1 }
 0x545   :  { %v524_v59 = vadd.f32 1e-05, %v523_v58  ;;  %v741_v60 = vpop.f32.mrb[5].mxu1 }
 0x547   :  { %803 = vrsqrt.f32 %v524_v59 }
 0x551   :  { %v804_v61 = vpop.eup %803 }
 0x552   :  { %v528_v62 = vmul.f32 %v804_v61, %v452_v51 }
 0x554   :  { %749 = vmatmul.mubr.msk.f32.vlgmr.msra.gmra.mrb[6].mxu0 %vm378_vm3, %v528_v62 }
 0x627   :  { %v608_v0 = vpop.f32.mrb[6].mxu0 }
 0x628   :  { %v609_v2 = vadd.f32 %v628_v63, %v608_v0  ;;  %v750_v1 = vpop.f32.mrb[7].mxu0 }
 0x62a   :  { %805 = vtanh.f32 %v609_v2 }
 0x634   :  { %v806_v3 = vpop.eup %805 }
 0x635   :  { %614 = vst.msk [vmem:[%s1021_s9] sm:$0xff] %vm613_vm4, %v806_v3 }
 0x636   :  { %619 = vsyncpa [#allocation3], 1 }

// kernel: tpu_custom_call.1
= control target key start
LH: loop header
LB: loop body
LE: loop exit
PB: predicated region body
PF: predicated region fallthrough
CT: control target
= control target key end

     0   :  { %14 = vsyncpa [#allocation3], 0  ;;  %s831_s30 = smov [#allocation2]   ;;  %s1012_s0 = inlined_call_operand.hbm [shape: f32[8,32], index: 0, kind: input, shape index: {}]   ;;  %s1013_s1 = inlined_call_operand.vmem [shape: f32[32,48], index: 1, kind: input, shape index: {}]   ;;  %s1014_s2 = inlined_call_operand.vmem [shape: f32[48,24], index: 2, kind: input, shape index: {}]   ;;  %s1015_s3 = inlined_call_operand.vmem [shape: f32[24,3], index: 3, kind: input, shape index: {}]   ;;  %s1016_s4 = inlined_call_operand.vmem [shape: f32[1,48], index: 4, kind: input, shape index: {}]   ;;  %s1017_s5 = inlined_call_operand.vmem [shape: f32[1,24], index: 5, kind: input, shape index: {}]   ;;  %s1018_s6 = inlined_call_operand.vmem [shape: f32[1,3], index: 6, kind: input, shape index: {}]   ;;  %s1019_s7 = inlined_call_operand.vmem [shape: f32[48,48], index: 7, kind: input, shape index: {}]   ;;  %s1020_s8 = inlined_call_operand.vmem [shape: f32[24,24], index: 8, kind: input, shape index: {}]   ;;  %s1021_s9 = inlined_call_operand.vmem [shape: f32[8,3], index: 9, kind: output, shape index: {}]  }
   0x1   :  { %s21_s10 = sshll.u32 %s831_s30, 4  ;;  %s807_s13 = scalar_lea.hbm %s1012_s0, 128  ;;  %s22_s10 = int_to_ptr.vmem [resolvable:$true] %s21_s10 }
   0x2   :  { %p808_p0 = scmp.ne.s32.totalorder %s1012_s0, %s807_s13  ;;  %p811_p1 = scmp.lt.u32.totalorder %s807_s13, %s1012_s0 }
   0x4   :  { %p813_p2 = pnand %p811_p1, %p808_p0 }
   0x6   :  { %816 = shalt.err (!%p813_p2)
}
   0x7   :  { %s817_s18 = scalar_lea.vmem %s22_s10, 128  ;;  %p822_p4 = scmp.lt.s32.totalorder %s22_s10, %s22_s10 }
   0x8   :  { %p818_p3 = scmp.ne.s32.totalorder %s22_s10, %s817_s18  ;;  %p823_p5 = scmp.lt.s32.totalorder %s817_s18, %s817_s18 }
   0xa   :  { %p824_p6 = por %p823_p5, %p822_p4 }
   0xc   :  { %p825_p7 = pnand %p824_p6, %p818_p3 }
   0xe   :  { %828 = shalt.err (!%p825_p7)
}
   0xf   :  { %24 = dma.hbm_to_vmem [thread:$0]  %s1012_s0, 128, %s22_s10, [#allocation3]  }
  0x10   :  { %829 = dma.done.wait [#allocation3], 128  }
  0x11   :  { %830 = vsyncadd [#allocation3], 4294967168  ;;  %v832_v0 = vmov 0.0|0.0   ;;  %vm833_vm0 = vmmov 0   ;;  %v834_v1 = vmov 0.0   ;;  %v45_v2 = vld [vmem:[%s1013_s1] sm:$0xff] }
  0x12   :  { %751 = vmatprep.subr.bf16.mxu0 %v832_v0  ;;  %676 = vmatprep.mubr.msk.f32.mxu0 %vm833_vm0, %v834_v1  ;;  %v46_v3 = vld [vmem:[%s1013_s1 + $0x8] sm:$0xff]  ;;  %v47_v4 = vld [vmem:[%s1013_s1 + $0x10] sm:$0xff]  ;;  %v48_v6 = vld [vmem:[%s1013_s1 + $0x18] sm:$0xff]  ;;  %vm56_vm1 = vcmask 261120   ;;  %vm137_vm2 = vcmask 392192   ;;  %vm378_vm3 = vcmask 195584  }
  0x13   :  { %757 = vmatprep.subr.bf16.mxu1 %v832_v0  ;;  %691 = vmatprep.mubr.msk.f32.mxu1 %vm833_vm0, %v834_v1  ;;  %v752_v5 = vpack.c.bf16 %v46_v3, %v45_v2  ;;  %v755_v7 = vpack.c.bf16 %v48_v6, %v47_v4  ;;  %v44_v8 = vld [vmem:[#allocation2] sm:$0xff]  ;;  %v132_v10 = vld [vmem:[%s1019_s7 + $0x8] sm:$0xff]  ;;  %v133_v12 = vld [vmem:[%s1019_s7 + $0x10] sm:$0xff]  ;;  %vm613_vm4 = vcmask 23552  }
  0x14   :  { %v131_v9 = vld [vmem:[%s1019_s7] sm:$0xff]  ;;  %v134_v13 = vld [vmem:[%s1019_s7 + $0x18] sm:$0xff]  ;;  %v136_v16 = vld [vmem:[%s1019_s7 + $0x28] sm:$0xff] }
  0x15   :  { %753 = vmatpush3.bf16.msra.mxu0 %v752_v5  ;;  %v758_v11 = vpack.c.bf16 %v132_v10, %v131_v9  ;;  %v761_v14 = vpack.c.bf16 %v134_v13, %v133_v12  ;;  %v135_v15 = vld [vmem:[%s1019_s7 + $0x20] sm:$0xff]  ;;  %v289_v28 = vld [vmem:[%s1014_s2 + $0x8] sm:$0xff]  ;;  %v290_v30 = vld [vmem:[%s1014_s2 + $0x10] sm:$0xff] }
  0x16   :  { %754 = vmatprep.subr.bf16.mxu0 %v832_v0  ;;  %v764_v17 = vpack.c.bf16 %v136_v16, %v135_v15  ;;  %v620_v18 = vld [vmem:[%s1016_s4] ss:$0 sm:$0xff]  ;;  %v291_v31 = vld [vmem:[%s1014_s2 + $0x18] sm:$0xff]  ;;  %v293_v34 = vld [vmem:[%s1014_s2 + $0x28] sm:$0xff] }
  0x17   :  { %759 = vmatpush3.bf16.msra.mxu1 %v758_v11  ;;  %v288_v27 = vld [vmem:[%s1014_s2] sm:$0xff]  ;;  %v779_v32 = vpack.c.bf16 %v291_v31, %v290_v30  ;;  %v376_v42 = vld [vmem:[%s1020_s8 + $0x8] sm:$0xff]  ;;  %v377_v44 = vld [vmem:[%s1020_s8 + $0x10] sm:$0xff] }
  0x18   :  { %760 = vmatprep.subr.bf16.mxu1 %v832_v0  ;;  %v776_v29 = vpack.c.bf16 %v289_v28, %v288_v27  ;;  %v292_v33 = vld [vmem:[%s1014_s2 + $0x20] sm:$0xff]  ;;  %v530_v55 = vld [vmem:[%s1015_s3 + $0x8] sm:$0xff]  ;;  %v531_v57 = vld [vmem:[%s1015_s3 + $0x10] sm:$0xff] }
  0x19   :  { %756 = vmatpush3.bf16.msra.mxu0 %v755_v7  ;;  %v782_v35 = vpack.c.bf16 %v293_v34, %v292_v33  ;;  %v375_v41 = vld [vmem:[%s1020_s8] sm:$0xff] }
  0x1a   :  { %766 = vmatprep.subr.bf16.mxu0 %v832_v0  ;;  %v785_v43 = vpack.c.bf16 %v376_v42, %v375_v41  ;;  %v624_v45 = vld [vmem:[%s1017_s5] ss:$0 sm:$0xff] }
  0x1b   :  { %762 = vmatpush3.bf16.msra.mxu1 %v761_v14  ;;  %v529_v54 = vld [vmem:[%s1015_s3] sm:$0xff] }
  0x1c   :  { %677 = vmatmul.mubr.msk.f32.vlgmr.msra.gmra.mrb[0].mxu0 %vm56_vm1, %v44_v8  ;;  %763 = vmatprep.subr.bf16.mxu1 %v832_v0  ;;  %v791_v56 = vpack.c.bf16 %v530_v55, %v529_v54  ;;  %v628_v63 = vld [vmem:[%s1018_s6] ss:$0 sm:$0xff] }
  0x1d   :  { %706 = vmatprep.mubr.msk.f32.mxu0 %vm833_vm0, %v834_v1  ;;  %768 = vmatpush3.bf16.msra.mxu0 %v758_v11 }
  0x1e   :  { %769 = vmatprep.subr.bf16.mxu0 %v832_v0 }
  0x1f   :  { %765 = vmatpush3.bf16.msra.mxu1 %v764_v17 }
  0x20   :  { %775 = vmatprep.subr.bf16.mxu1 %v832_v0 }
  0x21   :  { %771 = vmatpush3.bf16.msra.mxu0 %v761_v14 }
  0x22   :  { %772 = vmatprep.subr.bf16.mxu0 %v832_v0 }
  0x25   :  { %774 = vmatpush3.bf16.msra.mxu0 %v764_v17 }
  0x26   :  { %784 = vmatprep.subr.bf16.mxu0 %v832_v0 }
  0xef   :  { %v126_v19 = vpop.f32.mrb[0].mxu0 }
  0xf0   :  { %v127_v20 = vadd.f32 %v620_v18, %v126_v19  ;;  %v678_v21 = vpop.f32.mrb[1].mxu0 }
  0xf2   :  { %797 = vtanh.f32 %v127_v20 }
  0xfc   :  { %v798_v22 = vpop.eup %797 }
  0xfd   :  { %692 = vmatmul.mubr.msk.f32.vlgmr.msra.gmra.mrb[0].mxu1 %vm137_vm2, %v798_v22 }
  0xfe   :  { %721 = vmatprep.mubr.msk.f32.mxu1 %vm833_vm0, %v834_v1  ;;  %777 = vmatpush3.bf16.msra.mxu1 %v776_v29 }
  0xff   :  { %778 = vmatprep.subr.bf16.mxu1 %v832_v0 }
 0x102   :  { %780 = vmatpush3.bf16.msra.mxu1 %v779_v32 }
 0x103   :  { %781 = vmatprep.subr.bf16.mxu1 %v832_v0 }
 0x106   :  { %783 = vmatpush3.bf16.msra.mxu1 %v782_v35 }
 0x107   :  { %787 = vmatprep.subr.bf16.mxu1 %v832_v0 }
 0x1d0   :  { %v207_v23 = vpop.f32.mrb[0].mxu1 }
 0x1d1   :  { %v211_v24 = vsub.f32 %v798_v22, %v207_v23  ;;  %v693_v25 = vpop.f32.mrb[1].mxu1 }
 0x1d3   :  { %v212_v26 = vmul.f32 %v211_v24, %v211_v24 }
 0x1d5   :  { %707 = vmatmul.mubr.msk.f32.vlgmr.msra.gmra.mrb[2].mxu0 %vm137_vm2, %v212_v26 }
 0x1d6   :  { %730 = vmatprep.mubr.msk.f32.mxu0 %vm833_vm0, %v834_v1  ;;  %786 = vmatpush3.bf16.msra.mxu0 %v785_v43 }
 0x1d7   :  { %728 = vmatprep.subr.mxu0 %v834_v1 }
 0x1da   :  { %729 = vmatpush3.msra.mxu0 %v377_v44 }
 0x1db   :  { %790 = vmatprep.subr.bf16.mxu0 %v832_v0 }
 0x2a8   :  { %v282_v36 = vpop.f32.mrb[2].mxu0 }
 0x2a9   :  { %v283_v37 = vadd.f32 1e-05, %v282_v36  ;;  %v708_v38 = vpop.f32.mrb[3].mxu0 }
 0x2ab   :  { %799 = vrsqrt.f32 %v283_v37 }
 0x2b5   :  { %v800_v39 = vpop.eup %799 }
 0x2b6   :  { %v287_v40 = vmul.f32 %v800_v39, %v211_v24 }
 0x2b8   :  { %722 = vmatmul.mubr.msk.f32.vlgmr.msra.gmra.mrb[2].mxu1 %vm137_vm2, %v287_v40 }
 0x2b9   :  { %739 = vmatprep.mubr.msk.f32.mxu1 %vm833_vm0, %v834_v1  ;;  %789 = vmatpush3.bf16.msra.mxu1 %v785_v43 }
 0x2ba   :  { %737 = vmatprep.subr.mxu1 %v834_v1 }
 0x2bd   :  { %738 = vmatpush3.msra.mxu1 %v377_v44 }
 0x38b   :  { %v370_v46 = vpop.f32.mrb[2].mxu1 }
 0x38c   :  { %v371_v47 = vadd.f32 %v624_v45, %v370_v46  ;;  %v723_v48 = vpop.f32.mrb[3].mxu1 }
 0x38e   :  { %801 = vtanh.f32 %v371_v47 }
 0x398   :  { %v802_v49 = vpop.eup %801 }
 0x399   :  { %731 = vmatmul.mubr.msk.f32.vlgmr.msra.gmra.mrb[4].mxu0 %vm378_vm3, %v802_v49 }
 0x39a   :  { %748 = vmatprep.mubr.msk.f32.mxu0 %vm833_vm0, %v834_v1  ;;  %792 = vmatpush3.bf16.msra.mxu0 %v791_v56 }
 0x39b   :  { %746 = vmatprep.subr.mxu0 %v834_v1 }
 0x39e   :  { %747 = vmatpush3.msra.mxu0 %v531_v57 }
 0x46c   :  { %v448_v50 = vpop.f32.mrb[4].mxu0 }
 0x46d   :  { %v452_v51 = vsub.f32 %v802_v49, %v448_v50  ;;  %v732_v52 = vpop.f32.mrb[5].mxu0 }
 0x46f   :  { %v453_v53 = vmul.f32 %v452_v51, %v452_v51 }
 0x471   :  { %740 = vmatmul.mubr.msk.f32.vlgmr.msra.gmra.mrb[4].mxu1 %vm378_vm3, %v453_v53 }
 0x544   :  { %v523_v58 = vpop.f32.mrb[4].mxu1 }
 0x545   :  { %v524_v59 = vadd.f32 1e-05, %v523_v58  ;;  %v741_v60 = vpop.f32.mrb[5].mxu1 }
 0x547   :  { %803 = vrsqrt.f32 %v524_v59 }
 0x551   :  { %v804_v61 = vpop.eup %803 }
 0x552   :  { %v528_v62 = vmul.f32 %v804_v61, %v452_v51 }
 0x554   :  { %749 = vmatmul.mubr.msk.f32.vlgmr.msra.gmra.mrb[6].mxu0 %vm378_vm3, %v528_v62 }
 0x627   :  { %v608_v0 = vpop.f32.mrb[6].mxu0 }
 0x628   :  { %v609_v2 = vadd.f32 %v628_v63, %v608_v0  ;;  %v750_v1 = vpop.f32.mrb[7].mxu0 }
 0x62a   :  { %805 = vtanh.f32 %v609_v2 }
 0x634   :  { %v806_v3 = vpop.eup %805 }
 0x635   :  { %614 = vst.msk [vmem:[%s1021_s9] sm:$0xff] %vm613_vm4, %v806_v3 }
 0x636   :  { %619 = vsyncpa [#allocation3], 1 }

</bundles_post_ra>
